<compile_context>
chip_gen: v7x
topology: tpu7x:2x2x1
jax: 0.10.0
libtpu: 0.0.40
codegen_flags: <defaults>
</compile_context>

<pallas_src>
import math

import jax
import jax.numpy as jnp
from jax import lax
from jax.experimental import pallas as pl
from jax.experimental.pallas import tpu as pltpu


def _round_up(x, m):
    return ((x + m - 1) // m) * m


def _mlp_kernel(x_ref, w1_ref, b1_ref, w2_ref, b2_ref, w3_ref, b3_ref, oT_ref):
    x_blk = x_ref[...]                                                  # [bt, 98]

    # Layer 1: 98 -> 49, sigmoid.  Contract feature dims of W1[49,98] and
    # x_blk[bt,98]  ->  h1T[49, bt]  (transpose folded into the MXU pass).
    h1 = lax.dot_general(
        w1_ref[...], x_blk,
        dimension_numbers=(((1,), (1,)), ((), ())),
        preferred_element_type=jnp.float32,
    )                                                                   # [49, bt]
    h1 = jax.nn.sigmoid(h1 + b1_ref[...])

    # Layer 2: 49 -> 20, sigmoid   (MXU, lane-dense output [20, bt]).
    h2 = jnp.dot(w2_ref[...], h1, preferred_element_type=jnp.float32)   # [20, bt]
    h2 = jax.nn.sigmoid(h2 + b2_ref[...])

    # Layer 3: 20 -> 1, sigmoid    (VPU mul + XLU sublane reduce; skips MXU).
    y = jnp.sum(w3_ref[...] * h2, axis=0, keepdims=True) + b3_ref[...]  # [1, bt]
    oT_ref[...] = jax.nn.sigmoid(y).astype(oT_ref.dtype)                # lane-dense store


def net_forward(x, params, *, block_b=8192):
    """Fused 3-layer sigmoid MLP as one Pallas call, tiled over the batch.

    x:      [B, 98] float32
    params: dict with PyTorch-style tensors:
            w1 [49, 98], b1 [49], w2 [20, 49], b2 [20], w3 [1, 20], b3 [1]
    returns [B, 1] float32
    """
    B = x.shape[0]

    # ---- batch tiling: lane-aligned (256 for full-width MXU/vst), >=2 grid
    # steps when B is large (v7x megacore), and NO padding of x ----
    block_b = max(256, _round_up(block_b, 256))
    if B <= 512:
        bt = B                      # single block; block dims == full dims is legal
    else:
        bt = min(block_b, _round_up(pl.cdiv(B, 2), 256))
    grid = (pl.cdiv(B, bt),)

    # ---- small param reshapes (tiny, negligible): biases -> column vectors,
    # w3 (1,20) -> (20,1) for broadcast against h2T[20, bt] ----
    b1 = params["b1"].reshape(49, 1)
    b2 = params["b2"].reshape(20, 1)
    w3 = params["w3"].reshape(20, 1)
    b3 = params["b3"].reshape(1, 1)

    # ---- explicit VMEM budget: double-buffered x tile + output tile,
    # activation temporaries, resident weights; clamp for v5e/v7x safety ----
    budget = (
        2 * bt * 98 * 4            # x tile, double-buffered
        + 2 * bt * 4               # output tile, double-buffered
        + (49 + 20 + 1) * bt * 4   # h1/h2/y temporaries
        + 2 * (49 * 98 + 49 + 20 * 49 + 20 + 20 + 1) * 4  # weights/biases
    )
    vmem_limit = min(48 << 20, max(32 << 20, budget + (4 << 20)))

    outT = pl.pallas_call(
        _mlp_kernel,
        out_shape=jax.ShapeDtypeStruct((1, B), jnp.float32),
        grid=grid,
        in_specs=[
            # x tile marches along the batch (sublane) axis; no HBM transpose.
            pl.BlockSpec((bt, 98), lambda i: (i, 0)),
            # Weights / biases: constant index_map -> VMEM-resident, DMA'd once.
            pl.BlockSpec((49, 98), lambda i: (0, 0)),
            pl.BlockSpec((49, 1), lambda i: (0, 0)),
            pl.BlockSpec((20, 49), lambda i: (0, 0)),
            pl.BlockSpec((20, 1), lambda i: (0, 0)),
            pl.BlockSpec((20, 1), lambda i: (0, 0)),
            pl.BlockSpec((1, 1), lambda i: (0, 0)),
        ],
        out_specs=pl.BlockSpec((1, bt), lambda i: (0, i)),
        compiler_params=pltpu.CompilerParams(
            dimension_semantics=("parallel",),
            vmem_limit_bytes=int(vmem_limit),
        ),
    )(x, params["w1"], b1, params["w2"], b2, w3, b3)

    # [1, B] -> [B, 1]; same memory order, so this is free-ish.
    return outT.reshape(B, 1)


def init_params(key):
    """Deterministic init mimicking torch.nn.Linear default:
    U(-1/sqrt(fan_in), 1/sqrt(fan_in)).  Weights stored PyTorch-style
    [out, in]; biases 1-D [out]."""
    dims = [(98, 49), (49, 20), (20, 1)]
    params = {}
    for i, (fin, fout) in enumerate(dims, start=1):
        key, kw, kb = jax.random.split(key, 3)
        bound = 1.0 / math.sqrt(fin)
        params[f"w{i}"] = jax.random.uniform(
            kw, (fout, fin), jnp.float32, minval=-bound, maxval=bound)
        params[f"b{i}"] = jax.random.uniform(
            kb, (fout,), jnp.float32, minval=-bound, maxval=bound)
    return params


def _reference(x, params):
    h1 = jax.nn.sigmoid(x @ params["w1"].T + params["b1"])
    h2 = jax.nn.sigmoid(h1 @ params["w2"].T + params["b2"])
    return jax.nn.sigmoid(h2 @ params["w3"].T + params["b3"])


if __name__ == "__main__":
    key = jax.random.PRNGKey(0)
    key, kx1, kx2 = jax.random.split(key, 3)
    params = init_params(key)

    # Small batch: single block, block dims == full array dims.
    B1 = 8
    x1 = jax.random.normal(kx1, (B1, 98), dtype=jnp.float32)
    out1 = jax.block_until_ready(net_forward(x1, params))
    ref1 = _reference(x1, params)
    assert out1.shape == (B1, 1), out1.shape
    assert jnp.allclose(out1, ref1, atol=1e-5, rtol=1e-5), (
        float(jnp.max(jnp.abs(out1 - ref1))))

    # Larger batch: multi-step grid with a ragged last block (no padding of x).
    B2 = 1000
    x2 = jax.random.normal(kx2, (B2, 98), dtype=jnp.float32)
    out2 = jax.block_until_ready(net_forward(x2, params))
    ref2 = _reference(x2, params)
    assert out2.shape == (B2, 1), out2.shape
    assert jnp.allclose(out2, ref2, atol=1e-5, rtol=1e-5), (
        float(jnp.max(jnp.abs(out2 - ref2))))

    print("KERNEL_OK")
</pallas_src>

<mosaic_0001>
module attributes {stable_mosaic.version = 11 : i64} {
  func.func @_mlp_kernel(%arg0: i32, %arg1: memref<8x98xf32, #tpu.memory_space<vmem>>, %arg2: memref<49x98xf32, #tpu.memory_space<vmem>>, %arg3: memref<49x1xf32, #tpu.memory_space<vmem>>, %arg4: memref<20x49xf32, #tpu.memory_space<vmem>>, %arg5: memref<20x1xf32, #tpu.memory_space<vmem>>, %arg6: memref<20x1xf32, #tpu.memory_space<vmem>>, %arg7: memref<1x1xf32, #tpu.memory_space<vmem>>, %arg8: memref<1x8xf32, #tpu.memory_space<vmem>>) attributes {dimension_semantics = [#tpu.dimension_semantics<parallel>], iteration_bounds = array<i64: 1>, scalar_prefetch = 0 : i64, scratch_operands = 0 : i64, tpu.core_type = #tpu.core_type<tc>, window_params = [{transform_indices = @transform_0, window_bounds = array<i64: 8, 98>}, {pipeline_mode = #tpu.pipeline_mode<synchronous>, transform_indices = @transform_1, window_bounds = array<i64: 49, 98>}, {pipeline_mode = #tpu.pipeline_mode<synchronous>, transform_indices = @transform_2, window_bounds = array<i64: 49, 1>}, {pipeline_mode = #tpu.pipeline_mode<synchronous>, transform_indices = @transform_3, window_bounds = array<i64: 20, 49>}, {pipeline_mode = #tpu.pipeline_mode<synchronous>, transform_indices = @transform_4, window_bounds = array<i64: 20, 1>}, {pipeline_mode = #tpu.pipeline_mode<synchronous>, transform_indices = @transform_5, window_bounds = array<i64: 20, 1>}, {pipeline_mode = #tpu.pipeline_mode<synchronous>, transform_indices = @transform_6, window_bounds = array<i64: 1, 1>}, {transform_indices = @transform_7, window_bounds = array<i64: 1, 8>}]} {
    %c0 = arith.constant 0 : index
    %c0_0 = arith.constant 0 : index
    %0 = vector.load %arg1[%c0, %c0_0] : memref<8x98xf32, #tpu.memory_space<vmem>>, vector<8x98xf32>
    %c0_1 = arith.constant 0 : index
    %c0_2 = arith.constant 0 : index
    %1 = vector.load %arg2[%c0_1, %c0_2] : memref<49x98xf32, #tpu.memory_space<vmem>>, vector<49x98xf32>
    %cst = arith.constant dense<0.000000e+00> : vector<49x8xf32>
    %2 = tpu.matmul %1, %0, %cst {dimension_numbers = #tpu.dot_dimension_numbers<[1], [1], [0], [0], [0, 0, 1, 0], [], []>} : vector<49x98xf32>, vector<8x98xf32>, vector<49x8xf32> -> vector<49x8xf32>
    %c0_3 = arith.constant 0 : index
    %c0_4 = arith.constant 0 : index
    %3 = vector.load %arg3[%c0_3, %c0_4] : memref<49x1xf32, #tpu.memory_space<vmem>>, vector<49x1xf32>
    %4 = vector.broadcast %3 : vector<49x1xf32> to vector<49x8xf32>
    %5 = arith.addf %2, %4 : vector<49x8xf32>
    %6 = arith.negf %5 : vector<49x8xf32>
    %7 = math.exp %6 : vector<49x8xf32>
    %cst_5 = arith.constant 1.000000e+00 : f32
    %8 = vector.broadcast %cst_5 : f32 to vector<49x8xf32>
    %9 = arith.addf %8, %7 : vector<49x8xf32>
    %10 = arith.divf %8, %9 : vector<49x8xf32>
    %c0_6 = arith.constant 0 : index
    %c0_7 = arith.constant 0 : index
    %11 = vector.load %arg4[%c0_6, %c0_7] : memref<20x49xf32, #tpu.memory_space<vmem>>, vector<20x49xf32>
    %cst_8 = arith.constant dense<0.000000e+00> : vector<20x8xf32>
    %12 = tpu.matmul %11, %10, %cst_8 {dimension_numbers = #tpu.dot_dimension_numbers<[1], [0], [0], [1], [0, 0, 1, 1], [], []>} : vector<20x49xf32>, vector<49x8xf32>, vector<20x8xf32> -> vector<20x8xf32>
    %c0_9 = arith.constant 0 : index
    %c0_10 = arith.constant 0 : index
    %13 = vector.load %arg5[%c0_9, %c0_10] : memref<20x1xf32, #tpu.memory_space<vmem>>, vector<20x1xf32>
    %14 = vector.broadcast %13 : vector<20x1xf32> to vector<20x8xf32>
    %15 = arith.addf %12, %14 : vector<20x8xf32>
    %16 = arith.negf %15 : vector<20x8xf32>
    %17 = math.exp %16 : vector<20x8xf32>
    %cst_11 = arith.constant 1.000000e+00 : f32
    %18 = vector.broadcast %cst_11 : f32 to vector<20x8xf32>
    %19 = arith.addf %18, %17 : vector<20x8xf32>
    %20 = arith.divf %18, %19 : vector<20x8xf32>
    %c0_12 = arith.constant 0 : index
    %c0_13 = arith.constant 0 : index
    %21 = vector.load %arg6[%c0_12, %c0_13] : memref<20x1xf32, #tpu.memory_space<vmem>>, vector<20x1xf32>
    %22 = vector.broadcast %21 : vector<20x1xf32> to vector<20x8xf32>
    %23 = arith.mulf %22, %20 : vector<20x8xf32>
    %cst_14 = arith.constant dense<0.000000e+00> : vector<8xf32>
    %24 = vector.multi_reduction <add>, %23, %cst_14 [0] : vector<20x8xf32> to vector<8xf32>
    %25 = vector.shape_cast %24 : vector<8xf32> to vector<1x8xf32>
    %c0_15 = arith.constant 0 : index
    %c0_16 = arith.constant 0 : index
    %26 = vector.load %arg7[%c0_15, %c0_16] : memref<1x1xf32, #tpu.memory_space<vmem>>, vector<1x1xf32>
    %27 = vector.broadcast %26 : vector<1x1xf32> to vector<1x8xf32>
    %28 = arith.addf %25, %27 : vector<1x8xf32>
    %29 = arith.negf %28 : vector<1x8xf32>
    %30 = math.exp %29 : vector<1x8xf32>
    %cst_17 = arith.constant 1.000000e+00 : f32
    %31 = vector.broadcast %cst_17 : f32 to vector<1x8xf32>
    %32 = arith.addf %31, %30 : vector<1x8xf32>
    %33 = arith.divf %31, %32 : vector<1x8xf32>
    %c0_18 = arith.constant 0 : index
    %c0_19 = arith.constant 0 : index
    %34 = vector.load %arg8[%c0_18, %c0_19] : memref<1x8xf32, #tpu.memory_space<vmem>>, vector<1x8xf32>
    tpu.vector_store %arg8[%c0_18, %c0_19], %33 {strides = array<i32>} : memref<1x8xf32, #tpu.memory_space<vmem>>, vector<1x8xf32>,
    return
  }
  func.func @transform_0(%arg0: i32) -> (i32, i32) {
    %c0_i32 = arith.constant 0 : i32
    %c0_i32_0 = arith.constant 0 : i32
    return %arg0, %c0_i32 : i32, i32
  }
  func.func @transform_1(%arg0: i32) -> (i32, i32) {
    %c0_i32 = arith.constant 0 : i32
    %c0_i32_0 = arith.constant 0 : i32
    %c0_i32_1 = arith.constant 0 : i32
    return %c0_i32, %c0_i32_0 : i32, i32
  }
  func.func @transform_2(%arg0: i32) -> (i32, i32) {
    %c0_i32 = arith.constant 0 : i32
    %c0_i32_0 = arith.constant 0 : i32
    %c0_i32_1 = arith.constant 0 : i32
    return %c0_i32, %c0_i32_0 : i32, i32
  }
  func.func @transform_3(%arg0: i32) -> (i32, i32) {
    %c0_i32 = arith.constant 0 : i32
    %c0_i32_0 = arith.constant 0 : i32
    %c0_i32_1 = arith.constant 0 : i32
    return %c0_i32, %c0_i32_0 : i32, i32
  }
  func.func @transform_4(%arg0: i32) -> (i32, i32) {
    %c0_i32 = arith.constant 0 : i32
    %c0_i32_0 = arith.constant 0 : i32
    %c0_i32_1 = arith.constant 0 : i32
    return %c0_i32, %c0_i32_0 : i32, i32
  }
  func.func @transform_5(%arg0: i32) -> (i32, i32) {
    %c0_i32 = arith.constant 0 : i32
    %c0_i32_0 = arith.constant 0 : i32
    %c0_i32_1 = arith.constant 0 : i32
    return %c0_i32, %c0_i32_0 : i32, i32
  }
  func.func @transform_6(%arg0: i32) -> (i32, i32) {
    %c0_i32 = arith.constant 0 : i32
    %c0_i32_0 = arith.constant 0 : i32
    %c0_i32_1 = arith.constant 0 : i32
    return %c0_i32, %c0_i32_0 : i32, i32
  }
  func.func @transform_7(%arg0: i32) -> (i32, i32) {
    %c0_i32 = arith.constant 0 : i32
    %c0_i32_0 = arith.constant 0 : i32
    return %c0_i32, %arg0 : i32, i32
  }
}

</mosaic_0001>

<bundles_post_ra>
// kernel: tpu_custom_call.1
= control target key start
LH: loop header
LB: loop body
LE: loop exit
PB: predicated region body
PF: predicated region fallthrough
CT: control target
= control target key end

     0   :  { %s782_s0 = inlined_call_operand.vmem [shape: f32[8,98], index: 0, kind: input, shape index: {}]   ;;  %s783_s1 = inlined_call_operand.vmem [shape: f32[49,98], index: 1, kind: input, shape index: {}]   ;;  %s784_s2 = inlined_call_operand.vmem [shape: f32[49,1], index: 2, kind: input, shape index: {}]   ;;  %s785_s3 = inlined_call_operand.vmem [shape: f32[20,49], index: 3, kind: input, shape index: {}]   ;;  %s786_s4 = inlined_call_operand.vmem [shape: f32[20,1], index: 4, kind: input, shape index: {}]   ;;  %s787_s5 = inlined_call_operand.vmem [shape: f32[20,1], index: 5, kind: input, shape index: {}]   ;;  %s788_s6 = inlined_call_operand.<no memory space> [shape: f32[1,1], index: 6, kind: input, shape index: {}]   ;;  %s789_s7 = inlined_call_operand.hbm [shape: f32[1,8], index: 7, kind: output, shape index: {}]  }
   0x1   :  { %v12_v0 = vstv %s788_s6 }
   0x2   :  { %13 = vst [vmem:[#allocation2] sm:$0x1] %v12_v0 }
   0x3   :  { %v29_v1 = vld [vmem:[%s782_s0] sm:$0xff]  ;;  %vm79_vm0 = vcmask 801792   ;;  %v617_v2 = vmov 0.0   ;;  %vm618_vm1 = vmmov 0   ;;  %v619_v4 = vmov 0   ;;  %v39_v6 = vld [vmem:[%s784_s2 + $0x10] sm:$0xff] }
   0x4   :  { %487 = vmatprep.subr.mxu0 %v617_v2  ;;  %489 = vmatprep.mubr.msk.f32.mxu0 %vm618_vm1, %v617_v2  ;;  %v30_v3 = vld [vmem:[%s783_s1] sm:$0xff]  ;;  %v38_v7 = vld [vmem:[%s784_s2 + $0x8] sm:$0xff]  ;;  %v40_v8 = vld [vmem:[%s784_s2 + $0x18] sm:$0xff] }
   0x5   :  { %488 = vmatpush3.xpose.msk.msra.mxu0 %vm79_vm0, %v29_v1  ;;  %547 = vset.pattern.permute.xlu0 %v619_v4  ;;  %v37_v5 = vld [vmem:[%s784_s2] sm:$0xff]  ;;  %v31_v9 = vld [vmem:[%s783_s1 + $0x8] sm:$0xff] }
   0x6   :  { %46 = vperm.xlu0 %547, %v37_v5   ;;  %548 = vset.pattern.permute.xlu1 %v619_v4 }
   0x7   :  { %56 = vperm.xlu1 %548, %v39_v6   ;;  %524 = vmatprep.mubr.msk.f32.mxu1 %vm618_vm1, %v617_v2 }
   0x8   :  { %490 = vmatmul.mubr.msk.f32.vlgmr.msra.gmra.mrb[0].mxu0 %vm79_vm0, %v30_v3 }
   0x9   :  { %492 = vmatprep.mubr.msk.f32.mxu0 %vm618_vm1, %v617_v2 }
   0xa   :  { %51 = vperm.xlu0 %547, %v38_v7  }
   0xb   :  { %14 = vsyncpa [#allocation4], 0  ;;  %61 = vperm.xlu1 %548, %v40_v8   ;;  %v41_v10 = vld [vmem:[%s784_s2 + $0x20] sm:$0xff]  ;;  %v42_v11 = vld [vmem:[%s784_s2 + $0x28] sm:$0xff]  ;;  %v620_v25 = vmov 0.0|0.0   ;;  %vm277_vm2 = vcmask 1040384  }
   0xc   :  { %493 = vmatmul.mubr.msk.f32.gmra.mrb[2].mxu0 %vm79_vm0, %v31_v9  ;;  %v32_v12 = vld [vmem:[%s783_s1 + $0x10] sm:$0xff]  ;;  %v249_v14 = vld [vmem:[%s786_s4] sm:$0xff]  ;;  %v33_v15 = vld [vmem:[%s783_s1 + $0x18] sm:$0xff]  ;;  %533 = vmatprep.subr.bf16.mxu1 %v620_v25  ;;  %vm267_vm3 = vcmask 400384   ;;  %vm400_vm4 = vcmask 64512   ;;  %vm404_vm5 = vcmask 60416  }
   0xd   :  { %495 = vmatprep.mubr.msk.f32.mxu0 %vm618_vm1, %v617_v2  ;;  %v43_v13 = vld [vmem:[%s784_s2 + $0x30] sm:$0x1]  ;;  %v250_v16 = vld [vmem:[%s786_s4 + $0x8] sm:$0xff]  ;;  %v34_v18 = vld [vmem:[%s783_s1 + $0x20] sm:$0xff]  ;;  %vm430_vm6 = vcmask 57344  }
   0xe   :  { %66 = vperm.xlu0 %547, %v41_v10   ;;  %v251_v17 = vld [vmem:[%s786_s4 + $0x10] sm:$0xf]  ;;  %v379_v19 = vld [vmem:[%s787_s5] sm:$0xff]  ;;  %v380_v20 = vld [vmem:[%s787_s5 + $0x8] sm:$0xff] }
   0xf   :  { %71 = vperm.xlu1 %548, %v42_v11   ;;  %v35_v21 = vld [vmem:[%s783_s1 + $0x28] sm:$0xff]  ;;  %v381_v22 = vld [vmem:[%s787_s5 + $0x10] sm:$0xf]  ;;  %v413_v23 = vld [vmem:[#allocation2] sm:$0x1] }
  0x10   :  { %496 = vmatmul.mubr.msk.f32.gmra.mrb[4].mxu0 %vm79_vm0, %v32_v12  ;;  %v36_v24 = vld [vmem:[%s783_s1 + $0x30] sm:$0x1] }
  0x11   :  { %498 = vmatprep.mubr.msk.f32.mxu0 %vm618_vm1, %v617_v2 }
  0x12   :  { %76 = vperm.xlu0 %547, %v43_v13  }
  0x13   :  { %254 = vperm.xlu1 %548, %v249_v14  }
  0x14   :  { %499 = vmatmul.mubr.msk.f32.gmra.mrb[6].mxu0 %vm79_vm0, %v33_v15 }
  0x15   :  { %501 = vmatprep.mubr.msk.f32.mxu0 %vm618_vm1, %v617_v2 }
  0x16   :  { %259 = vperm.xlu0 %547, %v250_v16  }
  0x17   :  { %264 = vperm.xlu1 %548, %v251_v17  }
  0x18   :  { %502 = vmatmul.mubr.msk.f32.gmra.mrb[8].mxu0 %vm79_vm0, %v34_v18 }
  0x19   :  { %504 = vmatprep.mubr.msk.f32.mxu0 %vm618_vm1, %v617_v2 }
  0x1a   :  { %384 = vperm.xlu0 %547, %v379_v19  }
  0x1b   :  { %389 = vperm.xlu1 %548, %v380_v20  }
  0x1c   :  { %505 = vmatmul.mubr.msk.f32.gmra.mrb[10].mxu0 %vm79_vm0, %v35_v21  ;;  %v246_v21 = vld [vmem:[%s785_s3] sm:$0xff] }
  0x1d   :  { %507 = vmatprep.mubr.msk.f32.mxu0 %vm618_vm1, %v617_v2 }
  0x1e   :  { %394 = vperm.xlu0 %547, %v381_v22  }
  0x1f   :  { %416 = vperm.xlu1 %548, %v413_v23   ;;  %v247_v23 = vld [vmem:[%s785_s3 + $0x8] sm:$0xff] }
  0x20   :  { %508 = vmatmul.mubr.msk.f32.gmra.mrb[12].mxu0 %vm79_vm0, %v36_v24  ;;  %v248_v24 = vld [vmem:[%s785_s3 + $0x10] sm:$0xf]  ;;  %s621_s3 = smov [#allocation3]  }
  0x21   :  { %s438_s20 = sshll.u32 %s621_s3, 4  ;;  %s439_s20 = int_to_ptr.vmem [resolvable:$true] %s438_s20 }
  0x22   :  { %s593_s21 = scalar_lea.vmem %s439_s20, 16  ;;  %s597_s22 = scalar_lea.vmem %s439_s20, 32 }
  0x23   :  { %p594_p0 = scmp.ne.s32.totalorder %s439_s20, %s593_s21  ;;  %p598_p1 = scmp.lt.s32.totalorder %s439_s20, %s439_s20 }
  0x24   :  { %p599_p2 = scmp.lt.s32.totalorder %s597_s22, %s593_s21 }
  0x26   :  { %p600_p3 = por %p599_p2, %p598_p1 }
  0x28   :  { %p601_p4 = pnand %p600_p3, %p594_p0 }
  0x85   :  { %v47_v26 = vpop.permute.xlu0 %46 }
  0x86   :  { %v57_v35 = vpop.permute.xlu1 %56 }
  0x89   :  { %v52_v31 = vpop.permute.xlu0 %51 }
  0x8a   :  { %v62_v41 = vpop.permute.xlu1 %61 }
  0x8d   :  { %v67_v47 = vpop.permute.xlu0 %66 }
  0x8e   :  { %v72_v54 = vpop.permute.xlu1 %71 }
  0x91   :  { %v77_v61 = vpop.permute.xlu0 %76 }
  0xdb   :  { %v170_v27 = vpop.f32.mrb[0].mxu0 }
  0xdc   :  { %v171_v28 = vadd.f32 %v170_v27, %v47_v26  ;;  %v491_v29 = vpop.f32.mrb[1].mxu0 }
  0xde   :  { %v454_v30 = vmul.f32 -1.442695, %v171_v28 }
  0xdf   :  { %v175_v32 = vpop.f32.mrb[2].mxu0 }
  0xe0   :  { %549 = vpow2.f32 %v454_v30  ;;  %v176_v33 = vadd.f32 %v175_v32, %v52_v31  ;;  %v494_v34 = vpop.f32.mrb[3].mxu0  ;;  %v260_v30 = vpop.permute.xlu0 %259 }
  0xe2   :  { %v455_v36 = vmul.f32 -1.442695, %v176_v33 }
  0xe3   :  { %v180_v37 = vpop.f32.mrb[4].mxu0 }
  0xe4   :  { %551 = vpow2.f32 %v455_v36  ;;  %v181_v38 = vadd.f32 %v180_v37, %v57_v35  ;;  %v497_v39 = vpop.f32.mrb[5].mxu0 }
  0xe6   :  { %v456_v40 = vmul.f32 -1.442695, %v181_v38 }
  0xe7   :  { %v185_v42 = vpop.f32.mrb[6].mxu0 }
  0xe8   :  { %553 = vpow2.f32 %v456_v40  ;;  %v186_v43 = vadd.f32 %v185_v42, %v62_v41  ;;  %v500_v44 = vpop.f32.mrb[7].mxu0 }
  0xea   :  { %v550_v45 = vpop.eup %549  ;;  %v457_v46 = vmul.f32 -1.442695, %v186_v43 }
  0xeb   :  { %v225_v48 = vadd.f32 1.0, %v550_v45  ;;  %v190_v49 = vpop.f32.mrb[8].mxu0 }
  0xec   :  { %555 = vpow2.f32 %v457_v46  ;;  %v191_v50 = vadd.f32 %v190_v49, %v67_v47  ;;  %v503_v51 = vpop.f32.mrb[9].mxu0  ;;  %v385_v46 = vpop.permute.xlu0 %384 }
  0xed   :  { %557 = vrcp.f32 %v225_v48 }
  0xee   :  { %v552_v52 = vpop.eup %551  ;;  %v458_v53 = vmul.f32 -1.442695, %v191_v50 }
  0xef   :  { %v226_v55 = vadd.f32 1.0, %v552_v52  ;;  %v195_v56 = vpop.f32.mrb[10].mxu0 }
  0xf0   :  { %559 = vpow2.f32 %v458_v53  ;;  %v196_v57 = vadd.f32 %v195_v56, %v72_v54  ;;  %v506_v58 = vpop.f32.mrb[11].mxu0  ;;  %v395_v54 = vpop.permute.xlu0 %394 }
  0xf1   :  { %561 = vrcp.f32 %v226_v55  ;;  %v419_v58 = vlaneseq }
  0xf2   :  { %v554_v59 = vpop.eup %553  ;;  %v459_v60 = vmul.f32 -1.442695, %v196_v57 }
  0xf3   :  { %v227_v62 = vadd.f32 1.0, %v554_v59  ;;  %v200_v63 = vpop.f32.mrb[12].mxu0 }
  0xf4   :  { %563 = vpow2.f32 %v459_v60  ;;  %v201_v0 = vadd.f32 %v200_v63, %v77_v61  ;;  %v509_v1 = vpop.f32.mrb[13].mxu0  ;;  %v420_v61 = vshrl.u32 %v419_v58, 7 }
  0xf5   :  { %565 = vrcp.f32 %v227_v62 }
  0xf6   :  { %v556_v3 = vpop.eup %555  ;;  %v460_v4 = vmul.f32 -1.442695, %v201_v0  ;;  %v421_v0 = vsub.s32 0, %v420_v61 }
  0xf7   :  { %v228_v5 = vadd.f32 1.0, %v556_v3  ;;  %v558_v6 = vpop.eup %557 }
  0xf8   :  { %567 = vpow2.f32 %v460_v4 }
  0xf9   :  { %569 = vrcp.f32 %v228_v5 }
  0xfa   :  { %v560_v7 = vpop.eup %559 }
  0xfb   :  { %v562_v8 = vpop.eup %561  ;;  %v229_v9 = vadd.f32 1.0, %v560_v7 }
  0xfc   :  { %v534_v10 = vpack.c.bf16 %v562_v8, %v558_v6 }
  0xfd   :  { %571 = vrcp.f32 %v229_v9 }
  0xfe   :  { %v564_v11 = vpop.eup %563  ;;  %535 = vmatpush3.bf16.msra.mxu1 %v534_v10 }
  0xff   :  { %v230_v12 = vadd.f32 1.0, %v564_v11  ;;  %536 = vmatprep.subr.bf16.mxu1 %v620_v25  ;;  %v566_v13 = vpop.eup %565 }
 0x101   :  { %573 = vrcp.f32 %v230_v12 }
 0x102   :  { %v568_v14 = vpop.eup %567 }
 0x103   :  { %v570_v15 = vpop.eup %569  ;;  %v231_v16 = vadd.f32 1.0, %v568_v14 }
 0x104   :  { %v537_v17 = vpack.c.bf16 %v570_v15, %v566_v13 }
 0x105   :  { %575 = vrcp.f32 %v231_v16 }
 0x106   :  { %538 = vmatpush3.bf16.msra.mxu1 %v537_v17 }
 0x107   :  { %539 = vmatprep.subr.bf16.mxu1 %v620_v25  ;;  %v572_v18 = vpop.eup %571  ;;  %v255_v25 = vpop.permute.xlu1 %254 }
 0x10b   :  { %v574_v19 = vpop.eup %573  ;;  %v265_v35 = vpop.permute.xlu1 %264 }
 0x10c   :  { %v540_v20 = vpack.c.bf16 %v574_v19, %v572_v18 }
 0x10e   :  { %541 = vmatpush3.bf16.msra.mxu1 %v540_v20 }
 0x10f   :  { %522 = vmatprep.subr.mxu1 %v617_v2  ;;  %v576_v22 = vpop.eup %575  ;;  %v390_v49 = vpop.permute.xlu1 %389 }
 0x112   :  { %523 = vmatpush3.msk.msra.mxu1 %vm277_vm2, %v576_v22 }
 0x113   :  { %525 = vmatmul.mubr.msk.f32.vlgmr.msra.gmra.mrb[0].mxu1 %vm267_vm3, %v246_v21  ;;  %v417_v3 = vpop.permute.xlu1 %416 }
 0x114   :  { %527 = vmatprep.mubr.msk.f32.mxu1 %vm618_vm1, %v617_v2  ;;  %v422_v5 = vrot.slane %v417_v3, %v421_v0 }
 0x117   :  { %528 = vmatmul.mubr.msk.f32.gmra.mrb[2].mxu1 %vm267_vm3, %v247_v23 }
 0x118   :  { %530 = vmatprep.mubr.msk.f32.mxu1 %vm618_vm1, %v617_v2 }
 0x11b   :  { %531 = vmatmul.mubr.msk.f32.gmra.mrb[4].mxu1 %vm267_vm3, %v248_v24 }
 0x1e6   :  { %v347_v26 = vpop.f32.mrb[0].mxu1 }
 0x1e7   :  { %v348_v27 = vadd.f32 %v347_v26, %v255_v25  ;;  %v526_v28 = vpop.f32.mrb[1].mxu1 }
 0x1e9   :  { %v465_v29 = vmul.f32 -1.442695, %v348_v27 }
 0x1ea   :  { %v352_v31 = vpop.f32.mrb[2].mxu1 }
 0x1eb   :  { %577 = vpow2.f32 %v465_v29  ;;  %v353_v32 = vadd.f32 %v352_v31, %v260_v30  ;;  %v529_v33 = vpop.f32.mrb[3].mxu1 }
 0x1ed   :  { %v466_v34 = vmul.f32 -1.442695, %v353_v32 }
 0x1ee   :  { %v357_v36 = vpop.f32.mrb[4].mxu1 }
 0x1ef   :  { %579 = vpow2.f32 %v466_v34  ;;  %v358_v2 = vadd.f32 %v357_v36, %v265_v35  ;;  %v532_v37 = vpop.f32.mrb[5].mxu1 }
 0x1f1   :  { %v467_v38 = vmul.f32 -1.442695, %v358_v2 }
 0x1f3   :  { %581 = vpow2.f32 %v467_v38 }
 0x1f5   :  { %v578_v39 = vpop.eup %577 }
 0x1f6   :  { %v370_v40 = vadd.f32 1.0, %v578_v39 }
 0x1f8   :  { %583 = vrcp.f32 %v370_v40 }
 0x1f9   :  { %v580_v41 = vpop.eup %579 }
 0x1fa   :  { %v371_v42 = vadd.f32 1.0, %v580_v41 }
 0x1fc   :  { %585 = vrcp.f32 %v371_v42 }
 0x1fd   :  { %v582_v43 = vpop.eup %581 }
 0x1fe   :  { %v372_v44 = vadd.f32 1.0, %v582_v43 }
 0x200   :  { %587 = vrcp.f32 %v372_v44 }
 0x202   :  { %v584_v45 = vpop.eup %583 }
 0x203   :  { %v397_v47 = vmul.f32 %v584_v45, %v385_v46 }
 0x205   :  { %v401_v51 = vsel %vm400_vm4, %v397_v47, 0.0 }
 0x206   :  { %v586_v48 = vpop.eup %585 }
 0x207   :  { %v398_v50 = vmul.f32 %v586_v48, %v390_v49 }
 0x209   :  { %v402_v52 = vsel %vm400_vm4, %v398_v50, 0.0 }
 0x20a   :  { %v588_v53 = vpop.eup %587  ;;  %v403_v55 = vadd.f32 %v402_v52, %v401_v51 }
 0x20b   :  { %v399_v56 = vmul.f32 %v588_v53, %v395_v54 }
 0x20d   :  { %v405_v57 = vsel %vm404_vm5, %v399_v56, 0.0 }
 0x20e   :  { %v406_v59 = vadd.f32 %v405_v57, %v403_v55 }
 0x210   :  { %v407_v60 = vrot.slane %v406_v59, 4 }
 0x212   :  { %v408_v62 = vadd.f32 %v407_v60, %v406_v59 }
 0x214   :  { %v409_v63 = vrot.slane %v408_v62, 2 }
 0x216   :  { %v410_v1 = vadd.f32 %v409_v63, %v408_v62 }
 0x218   :  { %v411_v4 = vrot.slane %v410_v1, 1 }
 0x21a   :  { %v412_v6 = vadd.f32 %v411_v4, %v410_v1 }
 0x21c   :  { %v423_v7 = vadd.f32 %v422_v5, %v412_v6 }
 0x21e   :  { %v468_v8 = vmul.f32 -1.442695, %v423_v7 }
 0x220   :  { %589 = vpow2.f32 %v468_v8 }
 0x22a   :  { %v590_v9 = vpop.eup %589 }
 0x22b   :  { %v427_v10 = vadd.f32 1.0, %v590_v9 }
 0x22d   :  { %591 = vrcp.f32 %v427_v10 }
 0x237   :  { %v592_v11 = vpop.eup %591 }
 0x238   :  { %431 = vst.msk [vmem:[#allocation3] sm:$0x1] %vm430_vm6, %v592_v11 }
 0x239   :  { %604 = shalt.err (!%p601_p4)
}
 0x23a   :  { %s605_s25 = scalar_lea.hbm %s789_s7, 16 }
 0x23b   :  { %p606_p5 = scmp.ne.s32.totalorder %s789_s7, %s605_s25  ;;  %p609_p6 = scmp.lt.u32.totalorder %s605_s25, %s789_s7 }
 0x23d   :  { %p611_p7 = pnand %p609_p6, %p606_p5 }
 0x23f   :  { %614 = shalt.err (!%p611_p7)
}
 0x240   :  { %441 = dma.vmem_to_hbm [thread:$0]  %s439_s20, 16, %s789_s7, [#allocation4]  }
 0x241   :  { %615 = dma.done.wait [#allocation4], 16  }
 0x242   :  { %616 = vsyncadd [#allocation4], 4294967280 }
 0x243   :  { %445 = vsyncpa [#allocation4], 1 }

</bundles_post_ra>
